<compile_context>
chip_gen: v6e
topology: v6e:2x2x1
jax: 0.10.0
libtpu: 0.0.40
codegen_flags: <defaults>
</compile_context>

<pallas_src>
import math

import jax
import jax.numpy as jnp
import numpy as np
from jax.experimental import pallas as pl
from jax.experimental.pallas import tpu as pltpu


# --------------------------------------------------------------------------- #
# Kernel: one broadcast-multiply-cast-store per (b, h, k) tile.
# --------------------------------------------------------------------------- #
def _alibi_kernel(arange_ref, slopes_ref, out_ref):
    # arange_ref: (tb, 1, tk)  float32   -- masked "position" values, lane axis = K
    # slopes_ref: (1, th, 1)   float32   -- per-head slopes, sublane axis = H
    # out_ref:    (tb, th, tk) out dtype
    out_ref[...] = (slopes_ref[...] * arange_ref[...]).astype(out_ref.dtype)


# --------------------------------------------------------------------------- #
# Slope initialisation (identical to Alibi.reset_parameters()), static numpy.
# --------------------------------------------------------------------------- #
def make_alibi_slopes(num_heads: int) -> np.ndarray:
    closest_power_of_2 = 2 ** math.floor(math.log2(num_heads))
    base = 2 ** (-(2 ** (-(math.log2(closest_power_of_2) - 3))))
    powers = np.arange(1, 1 + closest_power_of_2, dtype=np.float32)
    slopes = np.power(np.float32(base), powers)
    if closest_power_of_2 != num_heads:
        extra_base = 2 ** (-(2 ** (-(math.log2(2 * closest_power_of_2) - 3))))
        num_remaining_heads = min(closest_power_of_2, num_heads - closest_power_of_2)
        extra_powers = np.arange(1, 1 + 2 * num_remaining_heads, 2, dtype=np.float32)
        slopes = np.concatenate(
            [slopes, np.power(np.float32(extra_base), extra_powers)], axis=0
        )
    return slopes.astype(np.float32)  # (num_heads,)


# --------------------------------------------------------------------------- #
# Block-size heuristics.
# --------------------------------------------------------------------------- #
def _pick_block_k(K: int) -> int:
    # Lane axis: largest multiple-of-128 divisor up to 2048, else the full dim
    # (legal when equal to the array extent).  Lane-dense output => unmasked vst.
    for c in (2048, 1024, 512, 256, 128):
        if c <= K and K % c == 0:
            return c
    return K


def _pick_block_h(H: int, out_itemsize: int) -> int:
    # Sublane axis: prefer multiples of the packed-sublane width (8 for f32,
    # 16 for bf16, 32 for 1-byte dtypes) so stores are unmasked vst.
    sub = max(8, 32 // max(out_itemsize, 1))
    for c in (128, 64, 32, 16, 8):
        if c <= H and H % c == 0 and c % sub == 0:
            return c
    for c in (64, 32, 16, 8):
        if c <= H and H % c == 0:
            return c
    return H  # equal-to-full-dim is always legal


def _pick_block_b(B: int, block_h: int, block_k: int, out_itemsize: int) -> int:
    # Grow the leading (batch) block so each output tile is a few MiB
    # (per-step overhead ~0.35us), while staying far under scoped VMEM with
    # depth-2 double buffering (v7x has only 64 MiB physical VMEM).
    budget = 4 * 1024 * 1024
    for tb in range(B, 0, -1):
        if B % tb == 0 and tb * block_h * block_k * out_itemsize <= budget:
            return tb
    return 1


# --------------------------------------------------------------------------- #
# Forward wrapper.
# --------------------------------------------------------------------------- #
def alibi_forward(attention_mask, batch_size: int, key_length: int,
                  num_heads: int, dtype=jnp.float32, *,
                  block_b=None, block_h=None, block_k=None) -> jnp.ndarray:
    """Pallas implementation of Alibi.forward. Returns (B, H, K) in `dtype`."""
    # ---- O(B*K) masked-cumsum prologue in plain XLA --------------------- #
    # Negligible next to the O(B*H*K) output writes the kernel produces.
    if attention_mask is None:
        B, K = batch_size, key_length
        arange = jnp.broadcast_to(
            jnp.arange(K, dtype=jnp.float32)[None, :], (B, K)
        )
    else:
        B, K = attention_mask.shape
        mask_i = attention_mask.astype(jnp.int32)
        cs = jnp.cumsum(mask_i, axis=-1) - 1                # exact integer cumsum
        arange = jnp.where(mask_i == 0, 0, cs).astype(jnp.float32)

    H = num_heads
    arange = arange.reshape(B, 1, K)                        # lane axis = K
    slopes = jnp.asarray(make_alibi_slopes(H)).reshape(1, H, 1)  # sublane axis = H

    out_itemsize = jnp.dtype(dtype).itemsize
    if block_k is None:
        block_k = _pick_block_k(K)
    if block_h is None:
        block_h = _pick_block_h(H, out_itemsize)
    if block_b is None:
        block_b = _pick_block_b(B, block_h, block_k, out_itemsize)

    grid = (pl.cdiv(B, block_b), pl.cdiv(H, block_h), pl.cdiv(K, block_k))

    out = pl.pallas_call(
        _alibi_kernel,
        out_shape=jax.ShapeDtypeStruct((B, H, K), dtype),
        grid=grid,
        in_specs=[
            pl.BlockSpec((block_b, 1, block_k), lambda b, h, k: (b, 0, k)),
            pl.BlockSpec((1, block_h, 1), lambda b, h, k: (0, h, 0)),
        ],
        out_specs=pl.BlockSpec(
            (block_b, block_h, block_k), lambda b, h, k: (b, h, k)
        ),
        compiler_params=pltpu.CompilerParams(
            # B and H tiles are fully independent -> megacore sharding on v7x;
            # K innermost/sequential keeps HBM writes streaming and contiguous.
            dimension_semantics=("parallel", "parallel", "arbitrary"),
            vmem_limit_bytes=32 * 1024 * 1024,
        ),
    )(arange, slopes)
    return out


# --------------------------------------------------------------------------- #
# Plain-JAX reference mirroring the PyTorch code, for sanity checking.
# --------------------------------------------------------------------------- #
def _reference(attention_mask, batch_size, key_length, num_heads, dtype):
    slopes = jnp.asarray(make_alibi_slopes(num_heads))
    if attention_mask is None:
        arange_t = jnp.broadcast_to(
            jnp.arange(key_length, dtype=jnp.float32)[None, None, :],
            (batch_size, 1, key_length),
        )
    else:
        mask_i = attention_mask.astype(jnp.int32)
        cs = jnp.cumsum(mask_i, axis=-1) - 1
        arange_t = jnp.where(mask_i == 0, 0, cs)[:, None, :].astype(jnp.float32)
    alibi = slopes[None, :, None] * arange_t
    return alibi.astype(dtype)


if __name__ == "__main__":
    key = jax.random.PRNGKey(0)

    # Case 1: f32 output, random 0/1 padding mask.
    B, H, K = 2, 8, 128
    attention_mask = jax.random.bernoulli(key, p=0.8, shape=(B, K)).astype(jnp.int32)
    out = jax.block_until_ready(alibi_forward(attention_mask, B, K, H, dtype=jnp.float32))
    ref = _reference(attention_mask, B, K, H, jnp.float32)
    assert out.shape == (B, H, K) and out.dtype == jnp.float32
    np.testing.assert_allclose(np.asarray(out), np.asarray(ref), rtol=1e-6, atol=1e-6)

    # Case 2: attention_mask=None path (plain arange).
    out_none = jax.block_until_ready(alibi_forward(None, B, K, H, dtype=jnp.float32))
    ref_none = _reference(None, B, K, H, jnp.float32)
    np.testing.assert_allclose(np.asarray(out_none), np.asarray(ref_none),
                               rtol=1e-6, atol=1e-6)

    # Case 3: bf16 output, non-power-of-two head count, K tiled across the grid.
    B3, H3, K3 = 2, 12, 1024
    mask3 = jax.random.bernoulli(jax.random.PRNGKey(0), p=0.9,
                                 shape=(B3, K3)).astype(jnp.int32)
    out3 = jax.block_until_ready(
        alibi_forward(mask3, B3, K3, H3, dtype=jnp.bfloat16, block_k=256))
    ref3 = _reference(mask3, B3, K3, H3, jnp.bfloat16)
    assert out3.shape == (B3, H3, K3) and out3.dtype == jnp.bfloat16
    np.testing.assert_allclose(np.asarray(out3, dtype=np.float32),
                               np.asarray(ref3, dtype=np.float32),
                               rtol=1e-2, atol=1e-2)

    print("KERNEL_OK")
</pallas_src>

<mosaic_0001>
module attributes {stable_mosaic.version = 11 : i64} {
  func.func @_alibi_kernel(%arg0: i32, %arg1: i32, %arg2: i32, %arg3: memref<2x1x128xf32, #tpu.memory_space<vmem>>, %arg4: memref<1x8x1xf32, #tpu.memory_space<vmem>>, %arg5: memref<2x8x128xf32, #tpu.memory_space<vmem>>) attributes {dimension_semantics = [#tpu.dimension_semantics<parallel>, #tpu.dimension_semantics<parallel>, #tpu.dimension_semantics<arbitrary>], iteration_bounds = array<i64: 1, 1, 1>, scalar_prefetch = 0 : i64, scratch_operands = 0 : i64, tpu.core_type = #tpu.core_type<tc>, window_params = [{transform_indices = @transform_0, window_bounds = array<i64: 2, 1, 128>}, {transform_indices = @transform_1, window_bounds = array<i64: 1, 8, 1>}, {transform_indices = @transform_2, window_bounds = array<i64: 2, 8, 128>}]} {
    %c0 = arith.constant 0 : index
    %c0_0 = arith.constant 0 : index
    %c0_1 = arith.constant 0 : index
    %0 = vector.load %arg4[%c0, %c0_0, %c0_1] : memref<1x8x1xf32, #tpu.memory_space<vmem>>, vector<1x8x1xf32>
    %c0_2 = arith.constant 0 : index
    %c0_3 = arith.constant 0 : index
    %c0_4 = arith.constant 0 : index
    %1 = vector.load %arg3[%c0_2, %c0_3, %c0_4] : memref<2x1x128xf32, #tpu.memory_space<vmem>>, vector<2x1x128xf32>
    %2 = vector.broadcast %0 : vector<1x8x1xf32> to vector<2x8x128xf32>
    %3 = vector.broadcast %1 : vector<2x1x128xf32> to vector<2x8x128xf32>
    %4 = arith.mulf %2, %3 : vector<2x8x128xf32>
    %c0_5 = arith.constant 0 : index
    %c0_6 = arith.constant 0 : index
    %c0_7 = arith.constant 0 : index
    %5 = vector.load %arg5[%c0_5, %c0_6, %c0_7] : memref<2x8x128xf32, #tpu.memory_space<vmem>>, vector<2x8x128xf32>
    tpu.vector_store %arg5[%c0_5, %c0_6, %c0_7], %4 {strides = array<i32>} : memref<2x8x128xf32, #tpu.memory_space<vmem>>, vector<2x8x128xf32>,
    return
  }
  func.func @transform_0(%arg0: i32, %arg1: i32, %arg2: i32) -> (i32, i32, i32) {
    %c0_i32 = arith.constant 0 : i32
    %c0_i32_0 = arith.constant 0 : i32
    return %arg0, %c0_i32, %arg2 : i32, i32, i32
  }
  func.func @transform_1(%arg0: i32, %arg1: i32, %arg2: i32) -> (i32, i32, i32) {
    %c0_i32 = arith.constant 0 : i32
    %c0_i32_0 = arith.constant 0 : i32
    %c0_i32_1 = arith.constant 0 : i32
    return %c0_i32, %arg1, %c0_i32_0 : i32, i32, i32
  }
  func.func @transform_2(%arg0: i32, %arg1: i32, %arg2: i32) -> (i32, i32, i32) {
    %c0_i32 = arith.constant 0 : i32
    return %arg0, %arg1, %arg2 : i32, i32, i32
  }
}

</mosaic_0001>

<bundles_post_ra>
// kernel: tpu_custom_call.1
= control target key start
LH: loop header
LB: loop body
LE: loop exit
PB: predicated region body
PF: predicated region fallthrough
CT: control target
= control target key end

     0   :  { %v81_v1 = vmov 0   ;;  %s112_s0 = inlined_call_operand.vmem [shape: f32[2,1,128], index: 0, kind: input, shape index: {}]   ;;  %s113_s1 = inlined_call_operand.vmem [shape: f32[1,8,1], index: 1, kind: input, shape index: {}]   ;;  %s114_s2 = inlined_call_operand.hbm [shape: f32[2,8,128], index: 2, kind: output, shape index: {}]  }
   0x1   :  { %v12_v0 = vld [vmem:[%s113_s1] sm:$0xff]  ;;  %58 = vset.pattern.permute.xlu0 %v81_v1 }
   0x2   :  { %7 = vsyncpa [#allocation3], 0  ;;  %17 = vperm.xlu0 %58, %v12_v0   ;;  %v52_v2 = vld [vmem:[%s112_s0] ss:$0 sm:$0xff]  ;;  %v53_v3 = vld [vmem:[%s112_s0 + $0x1] ss:$0 sm:$0xff] }
   0x3   :  { %s82_s15 = smov [#allocation2]  }
   0x4   :  { %s41_s16 = sshll.u32 %s82_s15, 4  ;;  %s42_s16 = int_to_ptr.vmem [resolvable:$true] %s41_s16 }
   0x5   :  { %s59_s1 = scalar_lea.vmem %s42_s16, 256  ;;  %p64_p1 = scmp.lt.s32.totalorder %s42_s16, %s42_s16 }
   0x6   :  { %p60_p0 = scmp.ne.s32.totalorder %s42_s16, %s59_s1  ;;  %p65_p2 = scmp.lt.s32.totalorder %s59_s1, %s59_s1 }
   0x8   :  { %p66_p3 = por %p65_p2, %p64_p1 }
   0xa   :  { %p67_p4 = pnand %p66_p3, %p60_p0 }
  0x7d   :  { %v18_v4 = vpop.permute.xlu0 %17 }
  0x7e   :  { %v32_v5 = vmul.f32 %v52_v2, %v18_v4  ;;  %v33_v6 = vmul.f32 %v53_v3, %v18_v4 }
  0x80   :  { %34 = vst [vmem:[#allocation2] sm:$0xff] %v32_v5  ;;  %35 = vst [vmem:[#allocation2 + $0x8] sm:$0xff] %v33_v6 }
  0x81   :  { %70 = shalt.err (!%p67_p4)
}
  0x82   :  { %s83_s17 = smov 128   ;;  %s84_s18 = smov 8  }
  0x83   :  { %47 = dma.vmem_to_hbm [thread:$0]  %s42_s16, 256, %s114_s2, [#allocation3], %s83_s17, %s83_s17, %s84_s18  }
  0x84   :  { %79 = dma.done.wait [#allocation3], 256  }
  0x85   :  { %80 = vsyncadd [#allocation3], 4294967040 }
  0x86   :  { %51 = vsyncpa [#allocation3], 1 }

</bundles_post_ra>
